<compile_context>
chip_gen: v6e
topology: v6e:2x2x1
jax: 0.10.0
libtpu: 0.0.40
codegen_flags: <defaults>
</compile_context>

<pallas_src>
import jax
import jax.numpy as jnp
from jax import lax
from jax.experimental import pallas as pl
from jax.experimental.pallas import tpu as pltpu


def _mxu_dtype(table_dtype):
    """Dtype to feed the MXU with: keep native bf16/f32, else upcast to f32."""
    if table_dtype == jnp.bfloat16 or table_dtype == jnp.float32:
        return table_dtype
    return jnp.float32


def _onehot_gather(states_ref, emb_ref):
    """x[b] = emb[states[b]] as a single one-hot MXU matmul (f32 accumulate)."""
    B = states_ref.shape[0]
    S = emb_ref.shape[0]
    mm_dtype = _mxu_dtype(emb_ref.dtype)

    ids = states_ref[...]                                # (B, 1) int32
    col = lax.broadcasted_iota(jnp.int32, (B, S), 1)     # (B, S) column ids
    onehot = (col == ids).astype(mm_dtype)               # 0/1 exact in bf16
    emb = emb_ref[...]
    if emb.dtype != mm_dtype:
        emb = emb.astype(mm_dtype)
    # One MXU matmul; exactly one nonzero term per row -> bit-exact gather.
    return jnp.dot(onehot, emb, preferred_element_type=jnp.float32)  # (B, D) f32


def _fused_kernel(states_ref, emb_ref, x_ref, cov_ref):
    # Monolithic path (small B/S/D): gather + cov in one grid step.
    x = _onehot_gather(states_ref, emb_ref)
    xq = x.astype(x_ref.dtype)        # lossless: every entry is a table entry
    x_ref[...] = xq
    # cov = x @ x.T without an explicit transpose (contract dim 1 with dim 1);
    # fed in the table dtype so bf16 tables use the single-pass MXU path.
    cov_ref[...] = lax.dot_general(
        xq, xq,
        dimension_numbers=(((1,), (1,)), ((), ())),
        preferred_element_type=jnp.float32,
    )


def _gather_kernel(states_ref, emb_ref, x_ref):
    x_ref[...] = _onehot_gather(states_ref, emb_ref).astype(x_ref.dtype)


def _cov_kernel(xi_ref, xj_ref, cov_ref):
    # cov[i, j] block = x_i @ x_j.T, contracting dim 1 with dim 1 (no XLU
    # transpose before the MXU).  Inputs are already in the table dtype.
    # NOTE: for very large B, compute only i <= j blocks and mirror on
    # writeback to halve the MXU work (cov is symmetric).
    cov_ref[...] = lax.dot_general(
        xi_ref[...], xj_ref[...],
        dimension_numbers=(((1,), (1,)), ((), ())),
        preferred_element_type=jnp.float32,
    )


def _pick_block_b(B):
    # Prefer 256-row blocks (fills v6e/v7x's 2x256 MXU), fall back to 128
    # (v5e MXU width / lane width).  Tile only when there is >1 block.
    for cand in (256, 128):
        if B % cand == 0 and B // cand >= 2:
            return cand
    return None


def state2emb_forward(states, emb_table):
    """states: int array (B, 1) or (B,);  emb_table: (state_num, dim)."""
    states = states.reshape(-1, 1).astype(jnp.int32)   # keep a 2-D lane layout
    B = states.shape[0]
    S, D = emb_table.shape
    itemsize = jnp.dtype(emb_table.dtype).itemsize
    block_b = _pick_block_b(B)

    if block_b is None:
        # Small-B monolithic path.  NOTE: at toy shapes this is pure
        # pallas_call launch overhead; plain XLA gather+dot is equally fast.
        # The win of this kernel is the fused structure at scaled shapes.
        cost = pl.CostEstimate(
            flops=2 * B * S * D + 2 * B * B * D,
            transcendentals=0,
            bytes_accessed=B * 4 + S * D * itemsize + B * D * itemsize + B * B * 4,
        )
        x, cov = pl.pallas_call(
            _fused_kernel,
            out_shape=(
                jax.ShapeDtypeStruct((B, D), emb_table.dtype),
                jax.ShapeDtypeStruct((B, B), jnp.float32),
            ),
            grid=(1,),
            in_specs=[
                pl.BlockSpec((B, 1), lambda i: (0, 0)),   # state indices
                pl.BlockSpec((S, D), lambda i: (0, 0)),   # full embedding table
            ],
            out_specs=(
                pl.BlockSpec((B, D), lambda i: (0, 0)),
                pl.BlockSpec((B, B), lambda i: (0, 0)),
            ),
            compiler_params=pltpu.CompilerParams(
                dimension_semantics=("arbitrary",),
                vmem_limit_bytes=32 * 1024 * 1024,
            ),
            cost_estimate=cost,
        )(states, emb_table)
        return x, cov

    # ---------------- Tiled path for large B ----------------
    nb = B // block_b

    # 1) Gather x in block_b-row blocks; "parallel" lets v7x use both TCs.
    #    The table block index is constant, so it is DMA'd once and stays
    #    resident across grid steps.
    gather_cost = pl.CostEstimate(
        flops=2 * B * S * D,
        transcendentals=0,
        bytes_accessed=B * 4 + S * D * itemsize + B * D * itemsize,
    )
    x = pl.pallas_call(
        _gather_kernel,
        out_shape=jax.ShapeDtypeStruct((B, D), emb_table.dtype),
        grid=(nb,),
        in_specs=[
            pl.BlockSpec((block_b, 1), lambda i: (i, 0)),
            pl.BlockSpec((S, D), lambda i: (0, 0)),
        ],
        out_specs=pl.BlockSpec((block_b, D), lambda i: (i, 0)),
        compiler_params=pltpu.CompilerParams(
            dimension_semantics=("parallel",),
            vmem_limit_bytes=32 * 1024 * 1024,
        ),
        cost_estimate=gather_cost,
    )(states, emb_table)

    # 2) cov = x @ x.T in (i, j) blocks; lane-dense (block_b is a multiple of
    #    128) f32 output blocks, both grid axes independent ("parallel").
    cov_cost = pl.CostEstimate(
        flops=2 * B * B * D,
        transcendentals=0,
        bytes_accessed=2 * nb * B * D * itemsize + B * B * 4,
    )
    cov = pl.pallas_call(
        _cov_kernel,
        out_shape=jax.ShapeDtypeStruct((B, B), jnp.float32),
        grid=(nb, nb),
        in_specs=[
            pl.BlockSpec((block_b, D), lambda i, j: (i, 0)),
            pl.BlockSpec((block_b, D), lambda i, j: (j, 0)),
        ],
        out_specs=pl.BlockSpec((block_b, block_b), lambda i, j: (i, j)),
        compiler_params=pltpu.CompilerParams(
            dimension_semantics=("parallel", "parallel"),
            vmem_limit_bytes=32 * 1024 * 1024,
        ),
        cost_estimate=cov_cost,
    )(x, x)
    return x, cov


if __name__ == "__main__":
    keys = jax.random.split(jax.random.PRNGKey(0), 4)

    def reference(states, emb_table):
        xr = emb_table[states.reshape(-1)]
        x32 = xr.astype(jnp.float32)
        covr = jnp.dot(x32, x32.T, precision=lax.Precision.HIGHEST)
        return xr, covr

    # --- Test 1: small f32 table (monolithic fused path), shapes matching
    #     the module's default nn.Embedding(state_num, dim) usage. ---
    state_num, dim, batch = 16, 32, 8
    emb_f32 = jax.random.normal(keys[0], (state_num, dim), dtype=jnp.float32)
    states_small = jax.random.randint(keys[1], (batch, 1), 0, state_num,
                                      dtype=jnp.int32)
    x, cov = jax.block_until_ready(state2emb_forward(states_small, emb_f32))
    x_ref, cov_ref = reference(states_small, emb_f32)
    assert x.shape == (batch, dim) and cov.shape == (batch, batch)
    assert jnp.allclose(x, x_ref, atol=1e-6, rtol=1e-6), "f32 gather mismatch"
    assert jnp.allclose(cov, cov_ref, atol=1e-4, rtol=1e-5), "f32 cov mismatch"

    # --- Test 2: bf16 table -> MXU fed in bf16 (no f32 upcast of the table);
    #     gather must be bit-exact. ---
    emb_bf16 = emb_f32.astype(jnp.bfloat16)
    xb, covb = jax.block_until_ready(state2emb_forward(states_small, emb_bf16))
    xb_ref, covb_ref = reference(states_small, emb_bf16)
    assert xb.dtype == jnp.bfloat16
    assert jnp.array_equal(xb, xb_ref), "bf16 gather mismatch"
    assert jnp.allclose(covb, covb_ref, atol=1e-2, rtol=1e-2), "bf16 cov mismatch"

    # --- Test 3: larger batch -> tiled path (128-row parallel gather blocks,
    #     (i, j)-tiled lane-dense cov blocks). ---
    state_num, dim, batch = 512, 128, 384
    emb_big = jax.random.normal(keys[2], (state_num, dim), dtype=jnp.float32)
    states_big = jax.random.randint(keys[3], (batch, 1), 0, state_num,
                                    dtype=jnp.int32)
    xt, covt = jax.block_until_ready(state2emb_forward(states_big, emb_big))
    xt_ref, covt_ref = reference(states_big, emb_big)
    assert xt.shape == (batch, dim) and covt.shape == (batch, batch)
    assert jnp.allclose(xt, xt_ref, atol=1e-6, rtol=1e-6), "tiled gather mismatch"
    assert jnp.allclose(covt, covt_ref, atol=1e-2, rtol=1e-2), "tiled cov mismatch"

    print("KERNEL_OK")
</pallas_src>

<mosaic_0001>
module attributes {stable_mosaic.version = 11 : i64} {
  func.func @_fused_kernel(%arg0: i32, %arg1: memref<8x1xi32, #tpu.memory_space<vmem>>, %arg2: memref<16x32xf32, #tpu.memory_space<vmem>>, %arg3: memref<8x32xf32, #tpu.memory_space<vmem>>, %arg4: memref<8x8xf32, #tpu.memory_space<vmem>>) attributes {dimension_semantics = [#tpu.dimension_semantics<arbitrary>], iteration_bounds = array<i64: 1>, scalar_prefetch = 0 : i64, scratch_operands = 0 : i64, tpu.core_type = #tpu.core_type<tc>, window_params = [{pipeline_mode = #tpu.pipeline_mode<synchronous>, transform_indices = @transform_0, window_bounds = array<i64: 8, 1>}, {pipeline_mode = #tpu.pipeline_mode<synchronous>, transform_indices = @transform_1, window_bounds = array<i64: 16, 32>}, {pipeline_mode = #tpu.pipeline_mode<synchronous>, transform_indices = @transform_2, window_bounds = array<i64: 8, 32>}, {pipeline_mode = #tpu.pipeline_mode<synchronous>, transform_indices = @transform_3, window_bounds = array<i64: 8, 8>}]} {
    %c0 = arith.constant 0 : index
    %c0_0 = arith.constant 0 : index
    %0 = vector.load %arg1[%c0, %c0_0] : memref<8x1xi32, #tpu.memory_space<vmem>>, vector<8x1xi32>
    %1 = tpu.iota {dimensions = array<i32: 1>} : vector<8x16xi32>
    %2 = vector.broadcast %0 : vector<8x1xi32> to vector<8x16xi32>
    %3 = arith.cmpi eq, %1, %2 : vector<8x16xi32>
    %4 = arith.extui %3 : vector<8x16xi1> to vector<8x16xi32>
    %5 = arith.sitofp %4 : vector<8x16xi32> to vector<8x16xf32>
    %c0_1 = arith.constant 0 : index
    %c0_2 = arith.constant 0 : index
    %6 = vector.load %arg2[%c0_1, %c0_2] : memref<16x32xf32, #tpu.memory_space<vmem>>, vector<16x32xf32>
    %cst = arith.constant dense<0.000000e+00> : vector<8x32xf32>
    %7 = tpu.matmul %5, %6, %cst {dimension_numbers = #tpu.dot_dimension_numbers<[1], [0], [0], [1], [0, 0, 1, 1], [], []>} : vector<8x16xf32>, vector<16x32xf32>, vector<8x32xf32> -> vector<8x32xf32>
    %c0_3 = arith.constant 0 : index
    %c0_4 = arith.constant 0 : index
    %8 = vector.load %arg3[%c0_3, %c0_4] : memref<8x32xf32, #tpu.memory_space<vmem>>, vector<8x32xf32>
    tpu.vector_store %arg3[%c0_3, %c0_4], %7 {strides = array<i32>} : memref<8x32xf32, #tpu.memory_space<vmem>>, vector<8x32xf32>,
    %cst_5 = arith.constant dense<0.000000e+00> : vector<8x8xf32>
    %9 = tpu.matmul %7, %7, %cst_5 {dimension_numbers = #tpu.dot_dimension_numbers<[1], [1], [0], [0], [0, 0, 1, 0], [], []>} : vector<8x32xf32>, vector<8x32xf32>, vector<8x8xf32> -> vector<8x8xf32>
    %c0_6 = arith.constant 0 : index
    %c0_7 = arith.constant 0 : index
    %10 = vector.load %arg4[%c0_6, %c0_7] : memref<8x8xf32, #tpu.memory_space<vmem>>, vector<8x8xf32>
    tpu.vector_store %arg4[%c0_6, %c0_7], %9 {strides = array<i32>} : memref<8x8xf32, #tpu.memory_space<vmem>>, vector<8x8xf32>,
    return
  }
  func.func @transform_0(%arg0: i32) -> (i32, i32) {
    %c0_i32 = arith.constant 0 : i32
    %c0_i32_0 = arith.constant 0 : i32
    %c0_i32_1 = arith.constant 0 : i32
    return %c0_i32, %c0_i32_0 : i32, i32
  }
  func.func @transform_1(%arg0: i32) -> (i32, i32) {
    %c0_i32 = arith.constant 0 : i32
    %c0_i32_0 = arith.constant 0 : i32
    %c0_i32_1 = arith.constant 0 : i32
    return %c0_i32, %c0_i32_0 : i32, i32
  }
  func.func @transform_2(%arg0: i32) -> (i32, i32) {
    %c0_i32 = arith.constant 0 : i32
    %c0_i32_0 = arith.constant 0 : i32
    %c0_i32_1 = arith.constant 0 : i32
    return %c0_i32, %c0_i32_0 : i32, i32
  }
  func.func @transform_3(%arg0: i32) -> (i32, i32) {
    %c0_i32 = arith.constant 0 : i32
    %c0_i32_0 = arith.constant 0 : i32
    %c0_i32_1 = arith.constant 0 : i32
    return %c0_i32, %c0_i32_0 : i32, i32
  }
}

</mosaic_0001>

<bundles_post_ra>
// kernel: tpu_custom_call.1
= control target key start
LH: loop header
LB: loop body
LE: loop exit
PB: predicated region body
PF: predicated region fallthrough
CT: control target
= control target key end

     0   :  { %9 = vsyncpa [#allocation3], 0  ;;  %s356_s0 = inlined_call_operand.vmem [shape: s32[8,1], index: 0, kind: input, shape index: {}]   ;;  %s357_s1 = inlined_call_operand.hbm [shape: f32[16,32], index: 1, kind: input, shape index: {}]   ;;  %s358_s2 = inlined_call_operand.hbm [shape: f32[8,32], index: 2, kind: output, shape index: {0}]   ;;  %s359_s3 = inlined_call_operand.hbm [shape: f32[8,8], index: 3, kind: output, shape index: {1}]  }
   0x1   :  { %10 = vsyncpa [#allocation4], 0 }
   0x2   :  { %11 = vsyncpa [#allocation7], 0  ;;  %s316_s12 = smov [#allocation2]  }
   0x3   :  { %s19_s13 = sshll.u32 %s316_s12, 4  ;;  %s20_s13 = int_to_ptr.vmem [resolvable:$true] %s19_s13 }
   0x4   :  { %s258_s14 = scalar_lea.vmem %s20_s13, 256  ;;  %p263_p1 = scmp.lt.s32.totalorder %s20_s13, %s20_s13 }
   0x5   :  { %p259_p0 = scmp.ne.s32.totalorder %s20_s13, %s258_s14  ;;  %p264_p2 = scmp.lt.s32.totalorder %s258_s14, %s258_s14 }
   0x7   :  { %p265_p3 = por %p264_p2, %p263_p1 }
   0x9   :  { %p266_p4 = pnand %p265_p3, %p259_p0 }
   0xb   :  { %269 = shalt.err (!%p266_p4)
}
   0xc   :  { %s317_s15 = smov 128   ;;  %s318_s16 = smov 8  }
   0xd   :  { %25 = dma.hbm_to_vmem [thread:$0]  %s357_s1, 256, %s20_s13, [#allocation3], %s317_s15, %s317_s15, %s318_s16  }
   0xe   :  { %310 = dma.done.wait [#allocation3], 256  }
   0xf   :  { %311 = vsyncadd [#allocation3], 4294967040  ;;  %v319_v0 = vmov 0   ;;  %v320_v1 = vmov 0.0   ;;  %vm321_vm0 = vmmov 0   ;;  %v29_v2 = vld [vmem:[%s356_s0] sm:$0xff]  ;;  %v30_v5 = vlaneseq }
  0x10   :  { %249 = vset.pattern.permute.xlu0 %v319_v0  ;;  %229 = vmatprep.subr.mxu0 %v320_v1  ;;  %v39_v3 = vld [vmem:[#allocation2 + $0x8] sm:$0xff]  ;;  %v38_v4 = vld [vmem:[#allocation2] sm:$0xff]  ;;  %vm40_vm1 = vcmask 130048   ;;  %vm114_vm3 = vcmask 261120   ;;  %s322_s0 = smov [#allocation5]  }
  0x11   :  { %236 = vmatprep.subr.mxu1 %v320_v1  ;;  %233 = vmatprep.mubr.msk.f32.mxu0 %vm321_vm0, %v320_v1  ;;  %v31_v6 = vand.u32 127, %v30_v5  ;;  %s197_s1 = sshll.u32 %s322_s0, 4  ;;  %s198_s1 = int_to_ptr.vmem [resolvable:$true] %s197_s1 }
  0x12   :  { %238 = vmatprep.mubr.msk.f32.mxu1 %vm321_vm0, %v320_v1  ;;  %33 = vperm.xlu0 %249, %v29_v2   ;;  %s270_s21 = scalar_lea.vmem %s198_s1, 128  ;;  %p275_p6 = scmp.lt.s32.totalorder %s198_s1, %s198_s1 }
  0x13   :  { %230 = vmatpush3.msra.mxu0 %v39_v3  ;;  %p271_p5 = scmp.ne.s32.totalorder %s198_s1, %s270_s21  ;;  %p276_p7 = scmp.lt.s32.totalorder %s270_s21, %s270_s21 }
  0x14   :  { %231 = vmatprep.subr.mxu0 %v320_v1 }
  0x15   :  { %232 = vmatpush3.msra.mxu0 %v38_v4  ;;  %p277_p8 = por %p276_p7, %p275_p6 }
  0x17   :  { %p278_p9 = pnand %p277_p8, %p271_p5 }
  0x8d   :  { %v34_v7 = vpop.permute.xlu0 %33 }
  0x8e   :  { %vm35_vm2 = vcmp.eq.s32.totalorder %v31_v6, %v34_v7 }
  0x8f   :  { %v220_v8 = vsel %vm35_vm2, 1.0, %v320_v1 }
  0x90   :  { %234 = vmatmul.mubr.msk.f32.vlgmr.msra.gmra.mxu0 %vm40_vm1, %v220_v8 }
 0x150   :  { %v110_v9 = vpop.f32.mrf.mxu0 }
 0x151   :  { %237 = vmatpush3.xpose.msk.msra.mxu1 %vm114_vm3, %v110_v9  ;;  %115 = vst.msk [vmem:[#allocation5] sm:$0xff] %vm114_vm3, %v110_v9 }
 0x152   :  { %v235_v10 = vpop.f32.mrf.mxu0 }
 0x154   :  { %239 = vmatmul.mubr.msk.f32.vlgmr.msra.gmra.mxu1 %vm114_vm3, %v110_v9 }
 0x155   :  { %281 = shalt.err (!%p278_p9)
}
 0x156   :  { %200 = dma.vmem_to_hbm [thread:$0]  %s198_s1, 128, %s358_s2, [#allocation4]   ;;  %vm189_vm4 = vcmask 64512  }
 0x157   :  { %s323_s24 = smov [#allocation6]  }
 0x158   :  { %s207_s25 = sshll.u32 %s323_s24, 4  ;;  %s208_s25 = int_to_ptr.vmem [resolvable:$true] %s207_s25 }
 0x159   :  { %s290_s26 = scalar_lea.vmem %s208_s25, 128  ;;  %p295_p11 = scmp.lt.s32.totalorder %s208_s25, %s208_s25 }
 0x15a   :  { %p291_p10 = scmp.ne.s32.totalorder %s208_s25, %s290_s26  ;;  %p296_p12 = scmp.lt.s32.totalorder %s290_s26, %s290_s26 }
 0x15c   :  { %p297_p13 = por %p296_p12, %p295_p11 }
 0x15e   :  { %p298_p0 = pnand %p297_p13, %p291_p10 }
 0x214   :  { %v185_v11 = vpop.f32.mrf.mxu1 }
 0x215   :  { %190 = vst.msk [vmem:[#allocation6] sm:$0xff] %vm189_vm4, %v185_v11 }
 0x216   :  { %v240_v12 = vpop.f32.mrf.mxu1 }
 0x217   :  { %301 = shalt.err (!%p298_p0)
}
 0x218   :  { %210 = dma.vmem_to_hbm [thread:$0]  %s208_s25, 128, %s359_s3, [#allocation7]  }
 0x219   :  { %312 = dma.done.wait [#allocation4], 128  }
 0x21a   :  { %313 = vsyncadd [#allocation4], 4294967168 }
 0x21b   :  { %314 = dma.done.wait [#allocation7], 128  }
 0x21c   :  { %315 = vsyncadd [#allocation7], 4294967168 }
 0x21d   :  { %217 = vsyncpa [#allocation3], 1 }
 0x21e   :  { %218 = vsyncpa [#allocation4], 1 }
 0x21f   :  { %219 = vsyncpa [#allocation7], 1 }

</bundles_post_ra>
